<compile_context>
chip_gen: v5e
topology: v5e:2x2
jax: 0.10.0
libtpu: 0.0.40
codegen_flags: <defaults>
</compile_context>

<pallas_src>
import functools

import jax
import jax.numpy as jnp
from jax.experimental import pallas as pl
from jax.experimental.pallas import tpu as pltpu

_MIB = 1024 * 1024


def _vmem_capacity_bytes():
    try:
        return int(pltpu.get_tpu_info().vmem_capacity_bytes)
    except Exception:
        return 64 * _MIB  # conservative default (v7x per-core VMEM)


def _working_set_bytes(br, bc, pred_itemsize):
    # Double-buffered pred tile + ~4 live (TB, TC) f32/int32 intermediates,
    # plus lane-padded target block (dbl-buffered) and 4 (TB,1) f32 scratch.
    bytes_per_elem = 2 * pred_itemsize + 4 * 4
    row_const = 4096
    return br * (bc * bytes_per_elem + row_const)


def _pick_tiles(n, c, pred_itemsize):
    """Choose (block_rows, block_cols)."""
    cap = _vmem_capacity_bytes()
    # Tile working-set budget: a large slice of VMEM, no flat 16 MiB cap.
    # 128 MiB parts (v5e/v6e) -> ~42 MiB; 64 MiB parts (v7x) -> ~21 MiB.
    budget = min(cap // 3, 48 * _MIB)
    bytes_per_elem = 2 * pred_itemsize + 4 * 4
    row_const = 4096

    n_ceil = max(8, ((n + 7) // 8) * 8)
    per_row_full = c * bytes_per_elem + row_const

    if 8 * per_row_full <= budget:
        # Full-row tiles: single pass over the class axis.
        bc = c
        br = budget // per_row_full
    else:
        # Vocab-scale C: tile the class axis (online logsumexp in the kernel).
        bc = ((budget // 256 - row_const) // bytes_per_elem) // 128 * 128
        bc = max(128, bc)
        bc = min(bc, ((c + 127) // 128) * 128)
        br = budget // (bc * bytes_per_elem + row_const)

    br = max(8, min(int(br), 4096))
    br = (br // 8) * 8
    br = min(br, n_ceil)
    # Keep at least two row tiles so the "parallel" axis can shard across both
    # v7x TensorCores; one extra grid step is noise on single-TC v5e/v6e.
    if n_ceil >= 16:
        half = ((-(-n_ceil // 2) + 7) // 8) * 8
        br = min(br, half)
    return br, int(bc)


def _label_smoothing_kernel(pred_ref, tgt_ref, out_ref,
                            m_sc, l_sc, s_sc, t_sc, *,
                            smooth_val, confidence, total_n, total_c,
                            block_rows, block_cols, mask_rows, mask_cols):
    i = pl.program_id(0)          # row tile   ("parallel")
    k = pl.program_id(1)          # class tile ("arbitrary", innermost)

    @pl.when(k == 0)
    def _():
        m_sc[...] = jnp.full_like(m_sc, -jnp.inf)
        l_sc[...] = jnp.zeros_like(l_sc)
        s_sc[...] = jnp.zeros_like(s_sc)
        t_sc[...] = jnp.zeros_like(t_sc)

    xr = pred_ref[...]                                    # (TB, TC) native dtype
    tb, tc = xr.shape
    x = xr.astype(jnp.float32)
    col = jax.lax.broadcasted_iota(jnp.int32, (tb, tc), 1) + k * block_cols

    if mask_cols:
        valid = col < total_c
        x_stable = jnp.where(valid, x, -jnp.inf)          # feeds max / exp
        x_sum = jnp.where(valid, x, 0.0)                  # feeds plain sums
        m_loc = jnp.max(x_stable, axis=-1, keepdims=True)
    else:
        x_stable = x
        x_sum = x
        # Row max on the native dtype (packed bf16 VPU on v6e/v7x); exact,
        # since max just selects an existing bf16-representable value.
        m_loc = jnp.max(xr, axis=-1, keepdims=True).astype(jnp.float32)

    # Online logsumexp across class tiles.
    m_old = m_sc[...]
    m_new = jnp.maximum(m_old, m_loc)
    l_sc[...] = (l_sc[...] * jnp.exp(m_old - m_new)
                 + jnp.sum(jnp.exp(x_stable - m_new), axis=-1, keepdims=True))
    m_sc[...] = m_new

    # Plain row-sum (smoothing term) and target-class logit (confidence term).
    s_sc[...] = s_sc[...] + jnp.sum(x_sum, axis=-1, keepdims=True)
    tgt = tgt_ref[...]                                    # (TB, 1) int32
    t_sc[...] = t_sc[...] + jnp.sum(
        jnp.where(col == tgt, x_sum, 0.0), axis=-1, keepdims=True)
    # TODO(synk): on v7x the two class-axis sums could be offloaded to the
    # idle MXU (matvec against a ones column) to take ~2 adds/elem off VALU.

    @pl.when(k == pl.num_programs(1) - 1)
    def _():
        per_row = (m_sc[...] + jnp.log(l_sc[...])
                   - smooth_val * s_sc[...] - confidence * t_sc[...])
        if mask_rows:
            # mask ragged-tail rows BEFORE the cross-row reduction
            row = (jax.lax.broadcasted_iota(jnp.int32, (tb, 1), 0)
                   + i * block_rows)
            per_row = jnp.where(row < total_n, per_row, 0.0)
        out_ref[...] = jnp.sum(per_row, axis=0, keepdims=True).reshape(1, 1, 1)


def label_smoothing_loss(pred, target, smoothing=0.0, *,
                         block_rows=None, block_cols=None):
    """pred: (N, C) float (any dtype), target: (N,) int. Returns f32 scalar."""
    n, c = pred.shape
    confidence = 1.0 - smoothing
    tgt2d = target.astype(jnp.int32).reshape(n, 1)
    itemsize = jnp.dtype(pred.dtype).itemsize

    auto_br, auto_bc = _pick_tiles(n, c, itemsize)
    br = int(block_rows) if block_rows is not None else auto_br
    bc = int(block_cols) if block_cols is not None else auto_bc

    num_row_tiles = pl.cdiv(n, br)
    num_col_tiles = pl.cdiv(c, bc)

    cap = _vmem_capacity_bytes()
    working = _working_set_bytes(br, bc, itemsize)
    vmem_limit = int(min(cap * 3 // 4, max(32 * _MIB, working + 16 * _MIB)))

    kernel = functools.partial(
        _label_smoothing_kernel,
        smooth_val=float(smoothing) / float(c),
        confidence=float(confidence),
        total_n=int(n),
        total_c=int(c),
        block_rows=int(br),
        block_cols=int(bc),
        mask_rows=(n % br != 0),
        mask_cols=(c % bc != 0),
    )

    partials = pl.pallas_call(
        kernel,
        out_shape=jax.ShapeDtypeStruct((num_row_tiles, 1, 1), jnp.float32),
        grid_spec=pltpu.PrefetchScalarGridSpec(
            num_scalar_prefetch=0,
            grid=(num_row_tiles, num_col_tiles),
            in_specs=[
                pl.BlockSpec((br, bc), lambda i, k: (i, k)),   # pred tile
                pl.BlockSpec((br, 1), lambda i, k: (i, 0)),    # target tile
            ],
            out_specs=pl.BlockSpec((1, 1, 1), lambda i, k: (i, 0, 0)),
            scratch_shapes=[pltpu.VMEM((br, 1), jnp.float32)] * 4,
        ),
        compiler_params=pltpu.CompilerParams(
            dimension_semantics=("parallel", "arbitrary"),
            vmem_limit_bytes=vmem_limit,
        ),
    )(pred, tgt2d)

    return jnp.sum(partials) / n


def _reference(pred, target, smoothing):
    confidence = 1.0 - smoothing
    logp = jax.nn.log_softmax(pred.astype(jnp.float32), axis=-1)
    n, c = pred.shape
    true_dist = jnp.full((n, c), smoothing / c, jnp.float32)
    true_dist = true_dist + confidence * jax.nn.one_hot(target, c, dtype=jnp.float32)
    return jnp.mean(jnp.sum(-true_dist * logp, axis=-1))


if __name__ == "__main__":
    key = jax.random.PRNGKey(0)
    k1, k2, k3, k4, k5, k6 = jax.random.split(key, 6)
    smoothing = 0.1

    # Case 1: f32 predictions, N divisible by the tile (grid splits into 2
    # row tiles so the "parallel" axis has work for both v7x TensorCores).
    N, C = 16, 32
    pred = jax.random.normal(k1, (N, C), dtype=jnp.float32)
    target = jax.random.randint(k2, (N,), 0, C, dtype=jnp.int32)
    loss = jax.block_until_ready(label_smoothing_loss(pred, target, smoothing=smoothing))
    ref = _reference(pred, target, smoothing)
    assert jnp.allclose(loss, ref, atol=1e-4, rtol=1e-4), (loss, ref)

    # Case 2: bf16 predictions (narrow HBM dtype, native-dtype row max) and
    # ragged N (exercises the in-kernel row masking of the final tile).
    N2, C2 = 13, 32
    pred2 = jax.random.normal(k3, (N2, C2), dtype=jnp.bfloat16)
    target2 = jax.random.randint(k4, (N2,), 0, C2, dtype=jnp.int32)
    loss2 = jax.block_until_ready(label_smoothing_loss(pred2, target2, smoothing=smoothing))
    ref2 = _reference(pred2, target2, smoothing)
    assert jnp.allclose(loss2, ref2, atol=1e-4, rtol=1e-4), (loss2, ref2)

    # Case 3: force the class-tiled online-logsumexp path (block_cols < C,
    # ragged C) — the path large-vocabulary inputs take automatically.
    N3, C3 = 24, 200
    pred3 = jax.random.normal(k5, (N3, C3), dtype=jnp.float32)
    target3 = jax.random.randint(k6, (N3,), 0, C3, dtype=jnp.int32)
    loss3 = jax.block_until_ready(
        label_smoothing_loss(pred3, target3, smoothing=smoothing,
                             block_rows=8, block_cols=128))
    ref3 = _reference(pred3, target3, smoothing)
    assert jnp.allclose(loss3, ref3, atol=1e-4, rtol=1e-4), (loss3, ref3)

    print("KERNEL_OK")
</pallas_src>

<mosaic_0001>
module attributes {stable_mosaic.version = 11 : i64} {
  func.func @_label_smoothing_kernel(%arg0: i32, %arg1: i32, %arg2: memref<8x32xf32, #tpu.memory_space<vmem>>, %arg3: memref<8x1xi32, #tpu.memory_space<vmem>>, %arg4: memref<1x1x1xf32, #tpu.memory_space<vmem>>, %arg5: memref<8x1xf32, #tpu.memory_space<vmem>>, %arg6: memref<8x1xf32, #tpu.memory_space<vmem>>, %arg7: memref<8x1xf32, #tpu.memory_space<vmem>>, %arg8: memref<8x1xf32, #tpu.memory_space<vmem>>) attributes {dimension_semantics = [#tpu.dimension_semantics<parallel>, #tpu.dimension_semantics<arbitrary>], iteration_bounds = array<i64: 2, 1>, scalar_prefetch = 0 : i64, scratch_operands = 4 : i64, tpu.core_type = #tpu.core_type<tc>, window_params = [{transform_indices = @transform_0, window_bounds = array<i64: 8, 32>}, {transform_indices = @transform_1, window_bounds = array<i64: 8, 1>}, {transform_indices = @transform_2, window_bounds = array<i64: 1, 1, 1>}]} {
    %c0_i32 = arith.constant 0 : i32
    %0 = arith.cmpi eq, %arg1, %c0_i32 : i32
    %1 = arith.extui %0 : i1 to i32
    %c0_i32_0 = arith.constant 0 : i32
    %2 = arith.cmpi ne, %1, %c0_i32_0 : i32
    scf.if %2 {
      %cst_26 = arith.constant 0xFF800000 : f32
      %42 = vector.broadcast %cst_26 : f32 to vector<8x1xf32>
      %c0_27 = arith.constant 0 : index
      %c0_28 = arith.constant 0 : index
      %43 = vector.load %arg5[%c0_27, %c0_28] : memref<8x1xf32, #tpu.memory_space<vmem>>, vector<8x1xf32>
      tpu.vector_store %arg5[%c0_27, %c0_28], %42 {strides = array<i32>} : memref<8x1xf32, #tpu.memory_space<vmem>>, vector<8x1xf32>,
      %cst_29 = arith.constant 0.000000e+00 : f32
      %44 = vector.broadcast %cst_29 : f32 to vector<8x1xf32>
      %c0_30 = arith.constant 0 : index
      %c0_31 = arith.constant 0 : index
      %45 = vector.load %arg6[%c0_30, %c0_31] : memref<8x1xf32, #tpu.memory_space<vmem>>, vector<8x1xf32>
      tpu.vector_store %arg6[%c0_30, %c0_31], %44 {strides = array<i32>} : memref<8x1xf32, #tpu.memory_space<vmem>>, vector<8x1xf32>,
      %cst_32 = arith.constant 0.000000e+00 : f32
      %46 = vector.broadcast %cst_32 : f32 to vector<8x1xf32>
      %c0_33 = arith.constant 0 : index
      %c0_34 = arith.constant 0 : index
      %47 = vector.load %arg7[%c0_33, %c0_34] : memref<8x1xf32, #tpu.memory_space<vmem>>, vector<8x1xf32>
      tpu.vector_store %arg7[%c0_33, %c0_34], %46 {strides = array<i32>} : memref<8x1xf32, #tpu.memory_space<vmem>>, vector<8x1xf32>,
      %cst_35 = arith.constant 0.000000e+00 : f32
      %48 = vector.broadcast %cst_35 : f32 to vector<8x1xf32>
      %c0_36 = arith.constant 0 : index
      %c0_37 = arith.constant 0 : index
      %49 = vector.load %arg8[%c0_36, %c0_37] : memref<8x1xf32, #tpu.memory_space<vmem>>, vector<8x1xf32>
      tpu.vector_store %arg8[%c0_36, %c0_37], %48 {strides = array<i32>} : memref<8x1xf32, #tpu.memory_space<vmem>>, vector<8x1xf32>,
    } else {
    }
    %c0 = arith.constant 0 : index
    %c0_1 = arith.constant 0 : index
    %3 = vector.load %arg2[%c0, %c0_1] : memref<8x32xf32, #tpu.memory_space<vmem>>, vector<8x32xf32>
    %4 = tpu.iota {dimensions = array<i32: 1>} : vector<8x32xi32>
    %c32_i32 = arith.constant 32 : i32
    %5 = arith.muli %arg1, %c32_i32 : i32
    %6 = vector.broadcast %5 : i32 to vector<8x32xi32>
    %7 = arith.addi %4, %6 : vector<8x32xi32>
    %cst = arith.constant dense<0xFF800000> : vector<8xf32>
    %8 = vector.multi_reduction <maximumf>, %3, %cst [1] : vector<8x32xf32> to vector<8xf32>
    %9 = vector.shape_cast %8 : vector<8xf32> to vector<8x1xf32>
    %c0_2 = arith.constant 0 : index
    %c0_3 = arith.constant 0 : index
    %10 = vector.load %arg5[%c0_2, %c0_3] : memref<8x1xf32, #tpu.memory_space<vmem>>, vector<8x1xf32>
    %11 = arith.maximumf %10, %9 : vector<8x1xf32>
    %c0_4 = arith.constant 0 : index
    %c0_5 = arith.constant 0 : index
    %12 = vector.load %arg6[%c0_4, %c0_5] : memref<8x1xf32, #tpu.memory_space<vmem>>, vector<8x1xf32>
    %13 = arith.subf %10, %11 : vector<8x1xf32>
    %14 = math.exp %13 : vector<8x1xf32>
    %15 = arith.mulf %12, %14 : vector<8x1xf32>
    %16 = vector.broadcast %11 : vector<8x1xf32> to vector<8x32xf32>
    %17 = arith.subf %3, %16 : vector<8x32xf32>
    %18 = math.exp %17 : vector<8x32xf32>
    %cst_6 = arith.constant dense<0.000000e+00> : vector<8xf32>
    %19 = vector.multi_reduction <add>, %18, %cst_6 [1] : vector<8x32xf32> to vector<8xf32>
    %20 = vector.shape_cast %19 : vector<8xf32> to vector<8x1xf32>
    %21 = arith.addf %15, %20 : vector<8x1xf32>
    %c0_7 = arith.constant 0 : index
    %c0_8 = arith.constant 0 : index
    %22 = vector.load %arg6[%c0_7, %c0_8] : memref<8x1xf32, #tpu.memory_space<vmem>>, vector<8x1xf32>
    tpu.vector_store %arg6[%c0_7, %c0_8], %21 {strides = array<i32>} : memref<8x1xf32, #tpu.memory_space<vmem>>, vector<8x1xf32>,
    %c0_9 = arith.constant 0 : index
    %c0_10 = arith.constant 0 : index
    %23 = vector.load %arg5[%c0_9, %c0_10] : memref<8x1xf32, #tpu.memory_space<vmem>>, vector<8x1xf32>
    tpu.vector_store %arg5[%c0_9, %c0_10], %11 {strides = array<i32>} : memref<8x1xf32, #tpu.memory_space<vmem>>, vector<8x1xf32>,
    %c0_11 = arith.constant 0 : index
    %c0_12 = arith.constant 0 : index
    %24 = vector.load %arg7[%c0_11, %c0_12] : memref<8x1xf32, #tpu.memory_space<vmem>>, vector<8x1xf32>
    %cst_13 = arith.constant dense<0.000000e+00> : vector<8xf32>
    %25 = vector.multi_reduction <add>, %3, %cst_13 [1] : vector<8x32xf32> to vector<8xf32>
    %26 = vector.shape_cast %25 : vector<8xf32> to vector<8x1xf32>
    %27 = arith.addf %24, %26 : vector<8x1xf32>
    %c0_14 = arith.constant 0 : index
    %c0_15 = arith.constant 0 : index
    %28 = vector.load %arg7[%c0_14, %c0_15] : memref<8x1xf32, #tpu.memory_space<vmem>>, vector<8x1xf32>
    tpu.vector_store %arg7[%c0_14, %c0_15], %27 {strides = array<i32>} : memref<8x1xf32, #tpu.memory_space<vmem>>, vector<8x1xf32>,
    %c0_16 = arith.constant 0 : index
    %c0_17 = arith.constant 0 : index
    %29 = vector.load %arg3[%c0_16, %c0_17] : memref<8x1xi32, #tpu.memory_space<vmem>>, vector<8x1xi32>
    %c0_18 = arith.constant 0 : index
    %c0_19 = arith.constant 0 : index
    %30 = vector.load %arg8[%c0_18, %c0_19] : memref<8x1xf32, #tpu.memory_space<vmem>>, vector<8x1xf32>
    %31 = vector.broadcast %29 : vector<8x1xi32> to vector<8x32xi32>
    %32 = arith.cmpi eq, %7, %31 : vector<8x32xi32>
    %cst_20 = arith.constant 0.000000e+00 : f32
    %33 = vector.broadcast %cst_20 : f32 to vector<8x32xf32>
    %34 = arith.select %32, %3, %33 : vector<8x32xi1>, vector<8x32xf32>
    %cst_21 = arith.constant dense<0.000000e+00> : vector<8xf32>
    %35 = vector.multi_reduction <add>, %34, %cst_21 [1] : vector<8x32xf32> to vector<8xf32>
    %36 = vector.shape_cast %35 : vector<8xf32> to vector<8x1xf32>
    %37 = arith.addf %30, %36 : vector<8x1xf32>
    %c0_22 = arith.constant 0 : index
    %c0_23 = arith.constant 0 : index
    %38 = vector.load %arg8[%c0_22, %c0_23] : memref<8x1xf32, #tpu.memory_space<vmem>>, vector<8x1xf32>
    tpu.vector_store %arg8[%c0_22, %c0_23], %37 {strides = array<i32>} : memref<8x1xf32, #tpu.memory_space<vmem>>, vector<8x1xf32>,
    %c0_i32_24 = arith.constant 0 : i32
    %39 = arith.cmpi eq, %arg1, %c0_i32_24 : i32
    %40 = arith.extui %39 : i1 to i32
    %c0_i32_25 = arith.constant 0 : i32
    %41 = arith.cmpi ne, %40, %c0_i32_25 : i32
    scf.if %41 {
      %c0_26 = arith.constant 0 : index
      %c0_27 = arith.constant 0 : index
      %42 = vector.load %arg5[%c0_26, %c0_27] : memref<8x1xf32, #tpu.memory_space<vmem>>, vector<8x1xf32>
      %c0_28 = arith.constant 0 : index
      %c0_29 = arith.constant 0 : index
      %43 = vector.load %arg6[%c0_28, %c0_29] : memref<8x1xf32, #tpu.memory_space<vmem>>, vector<8x1xf32>
      %44 = math.log %43 : vector<8x1xf32>
      %45 = arith.addf %42, %44 : vector<8x1xf32>
      %c0_30 = arith.constant 0 : index
      %c0_31 = arith.constant 0 : index
      %46 = vector.load %arg7[%c0_30, %c0_31] : memref<8x1xf32, #tpu.memory_space<vmem>>, vector<8x1xf32>
      %cst_32 = arith.constant 3.125000e-03 : f32
      %47 = vector.broadcast %cst_32 : f32 to vector<8x1xf32>
      %48 = arith.mulf %47, %46 : vector<8x1xf32>
      %49 = arith.subf %45, %48 : vector<8x1xf32>
      %c0_33 = arith.constant 0 : index
      %c0_34 = arith.constant 0 : index
      %50 = vector.load %arg8[%c0_33, %c0_34] : memref<8x1xf32, #tpu.memory_space<vmem>>, vector<8x1xf32>
      %cst_35 = arith.constant 0.899999976 : f32
      %51 = vector.broadcast %cst_35 : f32 to vector<8x1xf32>
      %52 = arith.mulf %51, %50 : vector<8x1xf32>
      %53 = arith.subf %49, %52 : vector<8x1xf32>
      %cst_36 = arith.constant dense<0.000000e+00> : vector<1xf32>
      %54 = vector.multi_reduction <add>, %53, %cst_36 [0] : vector<8x1xf32> to vector<1xf32>
      %55 = vector.shape_cast %54 : vector<1xf32> to vector<1x1xf32>
      %56 = vector.shape_cast %55 : vector<1x1xf32> to vector<1x1x1xf32>
      %c0_37 = arith.constant 0 : index
      %c0_38 = arith.constant 0 : index
      %c0_39 = arith.constant 0 : index
      %57 = vector.load %arg4[%c0_37, %c0_38, %c0_39] : memref<1x1x1xf32, #tpu.memory_space<vmem>>, vector<1x1x1xf32>
      tpu.vector_store %arg4[%c0_37, %c0_38, %c0_39], %56 {strides = array<i32>} : memref<1x1x1xf32, #tpu.memory_space<vmem>>, vector<1x1x1xf32>,
    } else {
    }
    return
  }
  func.func @transform_0(%arg0: i32, %arg1: i32) -> (i32, i32) {
    %c0_i32 = arith.constant 0 : i32
    return %arg0, %arg1 : i32, i32
  }
  func.func @transform_1(%arg0: i32, %arg1: i32) -> (i32, i32) {
    %c0_i32 = arith.constant 0 : i32
    %c0_i32_0 = arith.constant 0 : i32
    return %arg0, %c0_i32 : i32, i32
  }
  func.func @transform_2(%arg0: i32, %arg1: i32) -> (i32, i32, i32) {
    %c0_i32 = arith.constant 0 : i32
    %c0_i32_0 = arith.constant 0 : i32
    %c0_i32_1 = arith.constant 0 : i32
    return %arg0, %c0_i32, %c0_i32_0 : i32, i32, i32
  }
}

</mosaic_0001>

<bundles_post_ra>
// kernel: tpu_custom_call.1
= control target key start
LH: loop header
LB: loop body
LE: loop exit
PB: predicated region body
PF: predicated region fallthrough
CT: control target
= control target key end

     0   :  { %s415_s9 = smov 0   ;;  %s417_s10 = smov 0   ;;  %s468_s0 = inlined_call_operand.vmem [shape: f32[16,32], index: 0, kind: input, shape index: {}]   ;;  %s469_s1 = inlined_call_operand.vmem [shape: s32[16,1], index: 1, kind: input, shape index: {}]   ;;  %s470_s2 = inlined_call_operand.vmem [shape: f32[2,1,1], index: 2, kind: output, shape index: {}]  }
   0x1   :  { %s419_s11 = smov 0  }
   0x2 LB: > { %s24_s12 = sadd.s32 1, %s391_s10  ;;  %p333_p0 = scmp.ge.s32.totalorder %s395_s11, 1  ;;  %s395_s11 = sphi %s419_s11, %s12_s11   ;;  %s391_s10 = sphi %s417_s10, %s472_s10   ;;  %s387_s9 = sphi %s415_s9, %s471_s9  }
   0x3   : > { %p26_p1 = scmp.ge.s32.totalorder %s24_s12, 2  ;;  %p137_p2 = scmp.lt.s32.totalorder %s395_s11, 3 }
   0x5   : > { %s474_s12 = smov (%p26_p1, %s24_s12), 0  ;;  %p138_p3 = pnand %p333_p0, %p137_p2 }
   0x6   : > { %p163_p4 = scmp.lt.s32.totalorder (!%p138_p3), %s387_s9, 1 }
   0x7   : > { %141 = sbr.rel (%p138_p3) target bundleno = 417 (0x1a1), region = 28 }
   0xc   : > { %vm181_vm0 = vcmask 7168   ;;  %v397_v0 = vmov -inf   ;;  %s476_s9 = smov (!%p163_p4, %s387_s9), 1  ;;  %vm192_vm1 = vcmask 261120   ;;  %v398_v3 = vmov 0  }
   0xd   : > { %182 = vst.msk [vmem:[#allocation2] sm:$0xff] %vm181_vm0, %v397_v0  ;;  %s334_s13 = sshll.u32 %s476_s9, 3  ;;  %365 = vset.pattern.permute.xlu0 %v398_v3  ;;  %366 = vset.pattern.permute.xlu1 %v398_v3  ;;  %v399_v4 = vmov 0.0   ;;  %v187_v11 = vlaneseq  ;;  %s176_s22 = scalar_lea.vmem %s470_s2, %s476_s9  ;;  %vm257_vm3 = vcmask 0  }
   0xe   : > { %s169_s16 = scalar_lea.vmem %s468_s0, %s334_s13  ;;  %183 = vst.msk [vmem:[#allocation3] sm:$0xff] %vm181_vm0, %v399_v4  ;;  %s173_s19 = scalar_lea.vmem %s469_s1, %s334_s13 }
   0xf   : > { %v186_v1 = vld [vmem:[%s169_s16] sm:$0xff]  ;;  %184 = vst.msk [vmem:[#allocation4] sm:$0xff] %vm181_vm0, %v399_v4  ;;  %v188_v13 = vand.u32 127, %v187_v11 }
  0x10   : > { %v193_v2 = vsel %vm192_vm1, %v186_v1, -inf  ;;  %185 = vst.msk [vmem:[#allocation5] sm:$0xff] %vm181_vm0, %v399_v4  ;;  %v224_v5 = vld [vmem:[%s173_s19] sm:$0xff]  ;;  %v219_v10 = vsel %vm192_vm1, %v186_v1, 0.0 }
  0x11   : > { %194 = vmax.xlane.f32.xlu0 %v193_v2  ;;  %227 = vperm.xlu1 %366, %v224_v5  }
  0x12   : > { %220 = vadd.xlane.f32.xlu2 %v219_v10 }
  0x14   : > { %v196_v6 = vld [vmem:[#allocation2] sm:$0xff] }
  0x15   : > { %v198_v29 = vld [vmem:[#allocation3] sm:$0xff] }
  0x16   : > { %v218_v21 = vld [vmem:[#allocation4] sm:$0xff] }
  0x17   : > { %v225_v24 = vld [vmem:[#allocation5] sm:$0xff] }
  0x83   : > { %v228_v12 = vpop.permute.xlu1 %227 }
  0x84   : > { %v195_v7 = vpop.xlane.xlu0 %194  ;;  %vm229_vm2 = vcmp.eq.s32.totalorder %v188_v13, %v228_v12 }
  0x85   : > { %v197_v8 = vmax.f32 %v196_v6, %v195_v7  ;;  %v230_v14 = vsel %vm229_vm2, %v186_v1, 0.0  ;;  %v221_v22 = vpop.xlane.xlu2 %220 }
  0x86   : > { %v231_v15 = vsel %vm192_vm1, %v230_v14, 0.0  ;;  %v222_v23 = vadd.f32 %v221_v22, %v218_v21 }
  0x87   : > { %v199_v9 = vsub.f32 %v196_v6, %v197_v8  ;;  %217 = vst.msk [vmem:[#allocation2] sm:$0xff] %vm181_vm0, %v197_v8  ;;  %205 = vperm.xlu0 %365, %v197_v8   ;;  %232 = vadd.xlane.f32.xlu2 %v231_v15 }
  0x88   : > { %223 = vst.msk [vmem:[#allocation4] sm:$0xff] %vm181_vm0, %v222_v23 }
  0x89   : > { %v200_v27 = vmul.f32 1.442695, %v199_v9 }
  0x8e   : > { %v239_v38 = vld [vmem:[#allocation2] sm:$0xff] }
  0x8f   : > { %v244_v35 = vld [vmem:[#allocation4] sm:$0xff] }
  0x90   : > { %v245_v40 = vmul.f32 0.003125, %v244_v35 }
  0xf9   : > { %v206_v16 = vpop.permute.xlu0 %205 }
  0xfa   : > { %v208_v17 = vsub.f32 %v186_v1, %v206_v16  ;;  %v233_v25 = vpop.xlane.xlu2 %232 }
  0xfb   : > { %v234_v26 = vadd.f32 %v233_v25, %v225_v24 }
  0xfc   : > { %v209_v18 = vmul.f32 1.442695, %v208_v17 }
  0xfd   : > { %235 = vst.msk [vmem:[#allocation5] sm:$0xff] %vm181_vm0, %v234_v26 }
  0xfe   : > { %367 = vpow2.f32 %v209_v18 }
  0xff   : > { %369 = vpow2.f32 %v200_v27 }
 0x104   : > { %v368_v19 = vpop.eup %367  ;;  %v247_v36 = vld [vmem:[#allocation5] sm:$0xff] }
 0x105   : > { %v211_v20 = vsel %vm192_vm1, %v368_v19, 0.0  ;;  %v370_v28 = vpop.eup %369  ;;  %v248_v41 = vmul.f32 0.9, %v247_v36 }
 0x106   : > { %212 = vadd.xlane.f32.xlu1 %v211_v20  ;;  %v202_v30 = vmul.f32 %v370_v28, %v198_v29 }
 0x179   : > { %v213_v31 = vpop.xlane.xlu1 %212 }
 0x17a   : > { %v214_v32 = vadd.f32 %v213_v31, %v202_v30 }
 0x17c   : > { %216 = vst.msk [vmem:[#allocation3] sm:$0xff] %vm181_vm0, %v214_v32 }
 0x183   : > { %v240_v33 = vld [vmem:[#allocation3] sm:$0xff] }
 0x184   : > { %371 = vlog2.f32 %v240_v33 }
 0x18a   : > { %v372_v34 = vpop.eup %371 }
 0x18b   : > { %v242_v37 = vmul.f32 0.6931472, %v372_v34 }
 0x18d   : > { %v243_v39 = vadd.f32 %v242_v37, %v239_v38 }
 0x18f   : > { %v246_v42 = vsub.f32 %v243_v39, %v245_v40 }
 0x191   : > { %v249_v43 = vsub.f32 %v246_v42, %v248_v41 }
 0x193   : > { %v250_v44 = vsel %vm181_vm0, %v249_v43, 0.0 }
 0x194   : > { %v251_v45 = vrot.slane %v250_v44, 4 }
 0x196   : > { %v252_v46 = vadd.f32 %v251_v45, %v250_v44 }
 0x198   : > { %v253_v47 = vrot.slane %v252_v46, 2 }
 0x19a   : > { %v254_v48 = vadd.f32 %v253_v47, %v252_v46 }
 0x19c   : > { %v255_v49 = vrot.slane %v254_v48, 1 }
 0x19e   : > { %v256_v50 = vadd.f32 %v255_v49, %v254_v48 }
 0x1a0   : > { %258 = vst.msk [vmem:[%s176_s22] sm:$0x1] %vm257_vm3, %v256_v50 }
 0x1a1 PF: > { %s12_s11 = sadd.s32 1, %s395_s11   ;;  %s471_s9 = smov %s391_s10 }
 0x1a2   : > { %p9_p5 = scmp.ge.s32.totalorder %s12_s11, 4   ;;  %s472_s10 = smov %s474_s12 }
 0x1a4   :  { %11 = sbr.rel (!%p9_p5) target bundleno = 2 (0x2), region = 69 }

</bundles_post_ra>
